<compile_context>
chip_gen: v5e
topology: v5e:2x2
jax: 0.10.0
libtpu: 0.0.40
codegen_flags: <defaults>
</compile_context>

<pallas_src>
import jax
import jax.numpy as jnp
from jax import lax
from jax.experimental import pallas as pl
from jax.experimental.pallas import tpu as pltpu


def _round_up(n: int, m: int) -> int:
    return ((n + m - 1) // m) * m


def _gating_kernel(x_ref, w_ref, b_ref, o_ref):
    # x_ref: (TB, D) bf16   w_ref: (E_pad, D) bf16 (resident)   b_ref: (1, E_pad) f32 (resident)
    x = x_ref[...]
    w = w_ref[...]
    # Contract on D without materializing a transpose: (TB, D) x (E_pad, D) -> (TB, E_pad)
    acc = lax.dot_general(
        x, w,
        dimension_numbers=(((1,), (1,)), ((), ())),
        preferred_element_type=jnp.float32,
    )
    o_ref[...] = (acc + b_ref[...]).astype(o_ref.dtype)


def gating_network(x, weight, bias, *, block_b: int = 512):
    """x: (B, D) f32, weight: (E, D) f32 (PyTorch nn.Linear layout), bias: (E,) f32."""
    B, D = x.shape
    E = weight.shape[0]

    # Lane-dense output: pad E up to a multiple of 128.
    E_pad = _round_up(E, 128)
    # Batch tile: multiple of 8 sublanes, capped at block_b; pad B so it divides evenly.
    TB = min(block_b, _round_up(B, 8))
    B_pad = _round_up(B, TB)

    # Glue (one-time in a real model: store params pre-padded / pre-cast).
    x_p = jnp.pad(x, ((0, B_pad - B), (0, 0))).astype(jnp.bfloat16)         # (B_pad, D)
    w_p = jnp.pad(weight, ((0, E_pad - E), (0, 0))).astype(jnp.bfloat16)    # (E_pad, D)
    b_p = jnp.pad(bias, (0, E_pad - E)).astype(jnp.float32).reshape(1, E_pad)

    grid = (B_pad // TB,)
    out = pl.pallas_call(
        _gating_kernel,
        out_shape=jax.ShapeDtypeStruct((B_pad, E_pad), jnp.float32),
        grid_spec=pl.GridSpec(
            grid=grid,
            in_specs=[
                pl.BlockSpec((TB, D), lambda i: (i, 0)),        # x: streamed over batch
                pl.BlockSpec((E_pad, D), lambda i: (0, 0)),     # W: resident across grid
                pl.BlockSpec((1, E_pad), lambda i: (0, 0)),     # bias: resident across grid
            ],
            out_specs=pl.BlockSpec((TB, E_pad), lambda i: (i, 0)),
        ),
        compiler_params=pltpu.CompilerParams(
            dimension_semantics=("parallel",),
        ),
    )(x_p, w_p, b_p)

    # TODO(synk): for very large D, add a trailing "arbitrary" K grid axis with an
    # f32 VMEM accumulator (pl.when init/finalize) to keep (TB, tk) tiles in VMEM.
    return out[:B, :E]


if __name__ == "__main__":
    key = jax.random.PRNGKey(0)
    k_x, k_w, k_b = jax.random.split(key, 3)

    batch = 8
    input_dim = 32
    num_experts = 8

    # Deterministic synthetic parameters (shapes match nn.Linear(input_dim, num_experts)).
    x = jax.random.normal(k_x, (batch, input_dim), dtype=jnp.float32)
    weight = jax.random.normal(k_w, (num_experts, input_dim), dtype=jnp.float32) * 0.1
    bias = jax.random.normal(k_b, (num_experts,), dtype=jnp.float32) * 0.1

    gate = jax.jit(gating_network)
    out = jax.block_until_ready(gate(x, weight, bias))
    assert out.shape == (batch, num_experts)

    # Reference with matching bf16 operand quantization (f32 accumulate), same as kernel.
    x_q = x.astype(jnp.bfloat16).astype(jnp.float32)
    w_q = weight.astype(jnp.bfloat16).astype(jnp.float32)
    ref = x_q @ w_q.T + bias
    assert jnp.allclose(out, ref, atol=1e-4, rtol=1e-4)

    # Sanity vs. full-f32 F.linear semantics (loose tol for bf16 inputs).
    ref_f32 = x @ weight.T + bias
    assert jnp.allclose(out, ref_f32, atol=3e-2, rtol=3e-2)

    print("KERNEL_OK")
</pallas_src>

<mosaic_0001>
module attributes {stable_mosaic.version = 11 : i64} {
  func.func @_gating_kernel(%arg0: i32, %arg1: memref<8x32xbf16, #tpu.memory_space<vmem>>, %arg2: memref<128x32xbf16, #tpu.memory_space<vmem>>, %arg3: memref<1x128xf32, #tpu.memory_space<vmem>>, %arg4: memref<8x128xf32, #tpu.memory_space<vmem>>) attributes {dimension_semantics = [#tpu.dimension_semantics<parallel>], iteration_bounds = array<i64: 1>, scalar_prefetch = 0 : i64, scratch_operands = 0 : i64, tpu.core_type = #tpu.core_type<tc>, window_params = [{transform_indices = @transform_0, window_bounds = array<i64: 8, 32>}, {pipeline_mode = #tpu.pipeline_mode<synchronous>, transform_indices = @transform_1, window_bounds = array<i64: 128, 32>}, {pipeline_mode = #tpu.pipeline_mode<synchronous>, transform_indices = @transform_2, window_bounds = array<i64: 1, 128>}, {transform_indices = @transform_3, window_bounds = array<i64: 8, 128>}]} {
    %c0 = arith.constant 0 : index
    %c0_0 = arith.constant 0 : index
    %0 = vector.load %arg1[%c0, %c0_0] : memref<8x32xbf16, #tpu.memory_space<vmem>>, vector<8x32xbf16>
    %c0_1 = arith.constant 0 : index
    %c0_2 = arith.constant 0 : index
    %1 = vector.load %arg2[%c0_1, %c0_2] : memref<128x32xbf16, #tpu.memory_space<vmem>>, vector<128x32xbf16>
    %cst = arith.constant dense<0.000000e+00> : vector<8x128xf32>
    %2 = tpu.matmul %0, %1, %cst {dimension_numbers = #tpu.dot_dimension_numbers<[1], [1], [0], [0], [0, 0, 1, 0], [], []>} : vector<8x32xbf16>, vector<128x32xbf16>, vector<8x128xf32> -> vector<8x128xf32>
    %c0_3 = arith.constant 0 : index
    %c0_4 = arith.constant 0 : index
    %3 = vector.load %arg3[%c0_3, %c0_4] : memref<1x128xf32, #tpu.memory_space<vmem>>, vector<1x128xf32>
    %4 = vector.broadcast %3 : vector<1x128xf32> to vector<8x128xf32>
    %5 = arith.addf %2, %4 : vector<8x128xf32>
    %c0_5 = arith.constant 0 : index
    %c0_6 = arith.constant 0 : index
    %6 = vector.load %arg4[%c0_5, %c0_6] : memref<8x128xf32, #tpu.memory_space<vmem>>, vector<8x128xf32>
    tpu.vector_store %arg4[%c0_5, %c0_6], %5 {strides = array<i32>} : memref<8x128xf32, #tpu.memory_space<vmem>>, vector<8x128xf32>,
    return
  }
  func.func @transform_0(%arg0: i32) -> (i32, i32) {
    %c0_i32 = arith.constant 0 : i32
    %c0_i32_0 = arith.constant 0 : i32
    return %arg0, %c0_i32 : i32, i32
  }
  func.func @transform_1(%arg0: i32) -> (i32, i32) {
    %c0_i32 = arith.constant 0 : i32
    %c0_i32_0 = arith.constant 0 : i32
    %c0_i32_1 = arith.constant 0 : i32
    return %c0_i32, %c0_i32_0 : i32, i32
  }
  func.func @transform_2(%arg0: i32) -> (i32, i32) {
    %c0_i32 = arith.constant 0 : i32
    %c0_i32_0 = arith.constant 0 : i32
    %c0_i32_1 = arith.constant 0 : i32
    return %c0_i32, %c0_i32_0 : i32, i32
  }
  func.func @transform_3(%arg0: i32) -> (i32, i32) {
    %c0_i32 = arith.constant 0 : i32
    %c0_i32_0 = arith.constant 0 : i32
    return %arg0, %c0_i32 : i32, i32
  }
}

</mosaic_0001>

<bundles_post_ra>
// kernel: gating_network.1
= control target key start
LH: loop header
LB: loop body
LE: loop exit
PB: predicated region body
PF: predicated region fallthrough
CT: control target
= control target key end

     0   :  { %vm76_vm0 = vcmask 261120   ;;  %s266_s0 = inlined_call_operand.vmem [shape: bf16[8,32], index: 0, kind: input, shape index: {}]   ;;  %s267_s1 = inlined_call_operand.vmem [shape: bf16[128,32], index: 1, kind: input, shape index: {}]   ;;  %s268_s2 = inlined_call_operand.vmem [shape: f32[1,128], index: 2, kind: input, shape index: {}]   ;;  %s269_s3 = inlined_call_operand.hbm [shape: f32[8,128], index: 3, kind: output, shape index: {}]  }
   0x1   :  { %v174_v0 = vld [vmem:[%s267_s1 + $0x38] sm:$0xff] }
   0x2   :  { %v102_v1 = vsel %vm76_vm0, %v174_v0, 0 }
   0x3   :  { %8 = vsyncpa [#allocation3], 0  ;;  %104 = vmatpush.bf16.xpose.msra.mxu0 %v102_v1  ;;  %v173_v2 = vld [vmem:[%s267_s1 + $0x30] sm:$0xff]  ;;  %v172_v4 = vld [vmem:[%s267_s1 + $0x28] sm:$0xff]  ;;  %s203_s5 = smov [#allocation2]   ;;  %s125_s9 = sshll.u32 %s269_s3, 4  ;;  %s126_s9 = int_to_ptr.hbm [resolvable:$true] %s125_s9 }
   0x4   :  { %v99_v3 = vsel %vm76_vm0, %v173_v2, 0  ;;  %v96_v5 = vsel %vm76_vm0, %v172_v4, 0  ;;  %v171_v6 = vld [vmem:[%s267_s1 + $0x20] sm:$0xff]  ;;  %v170_v8 = vld [vmem:[%s267_s1 + $0x18] sm:$0xff]  ;;  %v169_v10 = vld [vmem:[%s267_s1 + $0x10] sm:$0xff]  ;;  %s123_s6 = sshll.u32 %s203_s5, 4  ;;  %s124_s6 = int_to_ptr.vmem [resolvable:$true] %s123_s6 }
   0x5   :  { %v93_v7 = vsel %vm76_vm0, %v171_v6, 0  ;;  %v90_v9 = vsel %vm76_vm0, %v170_v8, 0  ;;  %v87_v11 = vsel %vm76_vm0, %v169_v10, 0  ;;  %v168_v12 = vld [vmem:[%s267_s1 + $0x8] sm:$0xff]  ;;  %v167_v14 = vld [vmem:[%s267_s1] sm:$0xff] }
   0x6   :  { %v84_v13 = vsel %vm76_vm0, %v168_v12, 0  ;;  %v81_v15 = vsel %vm76_vm0, %v167_v14, 0  ;;  %v15_v16 = vld [vmem:[%s266_s0] sm:$0xf] }
   0x7   :  { %v176_v17 = vld [vmem:[%s268_s2] ss:$0 sm:$0xff] }
   0xb   :  { %105 = vmatpush.bf16.xpose.msra.mxu0 %v99_v3 }
  0x13   :  { %106 = vmatpush.bf16.xpose.msra.mxu0 %v96_v5 }
  0x1b   :  { %107 = vmatpush.bf16.xpose.msra.mxu0 %v93_v7 }
  0x23   :  { %108 = vmatpush.bf16.xpose.msra.mxu0 %v90_v9 }
  0x2b   :  { %109 = vmatpush.bf16.xpose.msra.mxu0 %v87_v11 }
  0x33   :  { %110 = vmatpush.bf16.xpose.msra.mxu0 %v84_v13 }
  0x3b   :  { %111 = vmatpush.bf16.xpose.msra.mxu0 %v81_v15 }
  0x42   :  { %166 = vmatmul.msk.bf16.vlgmr.msra.gmra.mxu0 %vm76_vm0, %v15_v16 }
  0xbf   :  { %v113_v18 = vpop.f32.mrf.mxu0 }
  0xc0   :  { %v114_v19 = vadd.f32 %v176_v17, %v113_v18 }
  0xc2   :  { %117 = vst [vmem:[#allocation2] sm:$0xff] %v114_v19 }
  0xc3   :  { %128 = dma.vmem_to_hbm [thread:$0]  %s124_s6, 128, %s126_s9, [#allocation3]  }
  0xc7   :  { %v115_v20 = vpop.f32.mrf.mxu0 }
  0xc8   :  { %201 = dma.done.wait [#allocation3], 128  }
  0xc9   :  { %202 = vsyncadd [#allocation3], 4294967168 }
  0xca   :  { %133 = vsyncpa [#allocation3], 1 }

</bundles_post_ra>
